<compile_context>
chip_gen: v7x
topology: tpu7x:2x2x1
jax: 0.10.0
libtpu: 0.0.40
codegen_flags: <defaults>
</compile_context>

<pallas_src>
import functools

import jax
import jax.numpy as jnp
from jax import lax
from jax.experimental import pallas as pl
from jax.experimental.pallas import tpu as pltpu

LN_EPS = 1e-5  # PyTorch nn.LayerNorm default
_HP = lax.Precision.HIGHEST


def _layernorm_t(h, gamma, beta):
    """LayerNorm over the leading (feature/sublane) axis of h: (d, tb)."""
    mean = jnp.mean(h, axis=0, keepdims=True)                    # (1, tb)
    var = jnp.mean((h - mean) ** 2, axis=0, keepdims=True)       # biased, like PyTorch
    return (h - mean) * lax.rsqrt(var + LN_EPS) * gamma + beta


def _layernorm_rows(h, gamma, beta):
    """Reference LayerNorm over the last axis (batch-major layout)."""
    mean = jnp.mean(h, axis=-1, keepdims=True)
    var = jnp.mean((h - mean) ** 2, axis=-1, keepdims=True)
    return (h - mean) * lax.rsqrt(var + LN_EPS) * gamma + beta


def retriever_kernel(reprs_ref, times_ref, w1t_ref, w2t_ref, w3t_ref, aux_ref,
                     o_ref, *, d1, d2, d3):
    # aux_ref layout: (d1, 12) columns (feature vectors padded to d1 rows):
    #   0: W1 time-feature column      1: b1   2: g1   3: be1
    #   4: b2   5: g2   6: be2
    #   7: b3   8: g3   9: be3
    #  10: W4 column (length d3)      11: [b4, 0, ...]
    x = reprs_ref[...]                               # (tb, pred_dim) f32
    t = times_ref[...]                               # (1, tb)        f32, lane-dense

    w1_time = aux_ref[:, 0:1]                        # (d1, 1)
    b1, g1, be1 = aux_ref[:, 1:2], aux_ref[:, 2:3], aux_ref[:, 3:4]
    b2, g2, be2 = aux_ref[0:d2, 4:5], aux_ref[0:d2, 5:6], aux_ref[0:d2, 6:7]
    b3, g3, be3 = aux_ref[0:d3, 7:8], aux_ref[0:d3, 8:9], aux_ref[0:d3, 9:10]
    w4 = aux_ref[0:d3, 10:11]                        # (d3, 1)
    b4 = aux_ref[0:1, 11:12]                         # (1, 1)

    # Layer 1: h1^T = W1T_repr . x^T  (A.B^T contraction)  + time rank-1 + b1.
    h = lax.dot_general(w1t_ref[...], x,
                        dimension_numbers=(((1,), (1,)), ((), ())),
                        precision=_HP,
                        preferred_element_type=jnp.float32)      # (d1, tb)
    h = h + w1_time * t + b1
    h = jnp.maximum(_layernorm_t(h, g1, be1), 0.0)

    # Layer 2: h2^T = W2T . h1^T
    h = jnp.dot(w2t_ref[...], h, precision=_HP,
                preferred_element_type=jnp.float32) + b2         # (d2, tb)
    h = jnp.maximum(_layernorm_t(h, g2, be2), 0.0)

    # Layer 3: h3^T = W3T . h2^T
    h = jnp.dot(w3t_ref[...], h, precision=_HP,
                preferred_element_type=jnp.float32) + b3         # (d3, tb)
    h = jnp.maximum(_layernorm_t(h, g3, be3), 0.0)

    # Layer 4: logits^T = w4^T . h3^T  -> (1, tb), lane-dense output store.
    logits = lax.dot_general(w4, h,
                             dimension_numbers=(((0,), (0,)), ((), ())),
                             precision=_HP,
                             preferred_element_type=jnp.float32) + b4
    o_ref[...] = jax.nn.sigmoid(logits).astype(o_ref.dtype)


def init_params(key, pred_dim, dtype=jnp.float32):
    """Deterministic init mimicking PyTorch Linear defaults (uniform +-1/sqrt(fan_in))."""
    d0 = pred_dim + 1
    dims = [d0, d0 // 2, d0 // 4, d0 // 8, 1]
    keys = jax.random.split(key, 2 * (len(dims) - 1))
    params = {}
    for li in range(len(dims) - 1):
        fan_in, fan_out = dims[li], dims[li + 1]
        bound = 1.0 / (fan_in ** 0.5)
        kw, kb = keys[2 * li], keys[2 * li + 1]
        params[f"w{li + 1}"] = jax.random.uniform(
            kw, (fan_in, fan_out), dtype, minval=-bound, maxval=bound)
        params[f"b{li + 1}"] = jax.random.uniform(
            kb, (fan_out,), dtype, minval=-bound, maxval=bound)
        if li < 3:  # LayerNorm after the first three linears
            params[f"g{li + 1}"] = jnp.ones((fan_out,), dtype)
            params[f"be{li + 1}"] = jnp.zeros((fan_out,), dtype)
    return params


def pack_params(params, pred_dim):
    """Build the 4 kernel parameter operands (transposed weights + packed aux)."""
    d0 = pred_dim + 1
    d1, d2, d3 = d0 // 2, d0 // 4, d0 // 8

    w1 = params["w1"].astype(jnp.float32)             # (d0, d1)
    w1t_repr = w1[:pred_dim].T                        # (d1, pred_dim)
    w1_time = w1[pred_dim]                            # (d1,) — time-feature column
    w2t = params["w2"].astype(jnp.float32).T          # (d2, d1)
    w3t = params["w3"].astype(jnp.float32).T          # (d3, d2)

    def pad_col(v):
        v = jnp.ravel(v).astype(jnp.float32)
        return jnp.pad(v, (0, d1 - v.shape[0]))

    cols = [
        w1_time, params["b1"], params["g1"], params["be1"],
        params["b2"], params["g2"], params["be2"],
        params["b3"], params["g3"], params["be3"],
        params["w4"][:, 0],                           # W4 column (length d3)
        params["b4"],                                 # scalar bias in row 0
    ]
    aux = jnp.stack([pad_col(c) for c in cols], axis=1)   # (d1, 12)
    return w1t_repr, w2t, w3t, aux


def _round_up(x, m):
    return ((x + m - 1) // m) * m


def _choose_tb(batch, tb_max=1024):
    # Small batches: a single block (splitting only adds ~0.35us/step overhead
    # and produces narrow masked stores).  Larger batches: >=2 blocks of >=256
    # rows, tb a multiple of 128 so the (1, tb) times/output blocks stay
    # lane-dense and the "parallel" grid axis can shard over v7x's 2 TCs.
    if batch <= 512:
        return max(8, _round_up(batch, 8))
    return min(tb_max, _round_up((batch + 1) // 2, 128))


def retriever_forward(params, reprs, times, tb_max=1024):
    B, pred_dim = reprs.shape
    d0 = pred_dim + 1
    d1, d2, d3 = d0 // 2, d0 // 4, d0 // 8

    w1t, w2t, w3t, aux = pack_params(params, pred_dim)

    tb = _choose_tb(B, tb_max)
    num_blocks = pl.cdiv(B, tb)
    Bp = num_blocks * tb

    x = reprs.astype(jnp.float32)
    t = times.astype(jnp.float32)
    if Bp != B:
        x = jnp.pad(x, ((0, Bp - B), (0, 0)))
        t = jnp.pad(t, (0, Bp - B))
    t = t.reshape(1, Bp)                              # lane-dense times row

    kernel = functools.partial(retriever_kernel, d1=d1, d2=d2, d3=d3)

    flops = 2 * Bp * (pred_dim * d1 + d1 * d2 + d2 * d3 + d3 + d1)
    bytes_accessed = 4 * (Bp * pred_dim + 2 * Bp
                          + d1 * pred_dim + d1 * d2 + d2 * d3 + 12 * d1)

    out = pl.pallas_call(
        kernel,
        out_shape=jax.ShapeDtypeStruct((1, Bp), jnp.float32),
        grid=(num_blocks,),
        in_specs=[
            pl.BlockSpec((tb, pred_dim), lambda i: (i, 0)),   # reprs rows
            pl.BlockSpec((1, tb), lambda i: (0, i)),          # times (lane-dense)
            pl.BlockSpec((d1, pred_dim), lambda i: (0, 0)),   # W1^T (repr part), resident
            pl.BlockSpec((d2, d1), lambda i: (0, 0)),         # W2^T, resident
            pl.BlockSpec((d3, d2), lambda i: (0, 0)),         # W3^T, resident
            pl.BlockSpec((d1, 12), lambda i: (0, 0)),         # packed aux params
        ],
        out_specs=pl.BlockSpec((1, tb), lambda i: (0, i)),
        compiler_params=pltpu.CompilerParams(
            dimension_semantics=("parallel",)),
        cost_estimate=pl.CostEstimate(
            flops=int(flops), transcendentals=int(4 * Bp),
            bytes_accessed=int(bytes_accessed)),
    )(x, t, w1t, w2t, w3t, aux)

    # (1, Bp) is already batch order on lanes; drop padding, match .squeeze().
    return out[0, :B].astype(reprs.dtype)


def retriever_reference(params, reprs, times):
    """Plain-JAX reference matching the PyTorch module exactly (f32, HIGHEST)."""
    x = jnp.concatenate([reprs, times[..., None].astype(reprs.dtype)], axis=-1)
    h = jnp.dot(x, params["w1"], precision=_HP) + params["b1"]
    h = jnp.maximum(_layernorm_rows(h, params["g1"], params["be1"]), 0.0)
    h = jnp.dot(h, params["w2"], precision=_HP) + params["b2"]
    h = jnp.maximum(_layernorm_rows(h, params["g2"], params["be2"]), 0.0)
    h = jnp.dot(h, params["w3"], precision=_HP) + params["b3"]
    h = jnp.maximum(_layernorm_rows(h, params["g3"], params["be3"]), 0.0)
    h = jax.nn.sigmoid(jnp.dot(h, params["w4"], precision=_HP) + params["b4"])
    return jnp.squeeze(h, axis=-1)


if __name__ == "__main__":
    key = jax.random.PRNGKey(0)
    kp, kr, kt = jax.random.split(key, 3)

    pred_dim = 63          # internal dims: 64 -> 32 -> 16 -> 8 -> 1

    params = init_params(kp, pred_dim)

    # Case 1: small batch, single block.
    batch = 16
    reprs = jax.random.normal(kr, (batch, pred_dim), dtype=jnp.float32)
    times = jax.random.uniform(kt, (batch,), dtype=jnp.float32) * 10.0
    out = retriever_forward(params, reprs, times)
    jax.block_until_ready(out)
    ref = retriever_reference(params, reprs, times)
    assert out.shape == (batch,)
    assert jnp.allclose(out, ref, atol=1e-5, rtol=1e-5), (out, ref)

    # Case 2: non-multiple-of-8 batch (padded rows inside a single block).
    batch2 = 20
    reprs2 = jax.random.normal(kr, (batch2, pred_dim), dtype=jnp.float32)
    times2 = jax.random.uniform(kt, (batch2,), dtype=jnp.float32) * 10.0
    out2 = retriever_forward(params, reprs2, times2)
    jax.block_until_ready(out2)
    ref2 = retriever_reference(params, reprs2, times2)
    assert out2.shape == (batch2,)
    assert jnp.allclose(out2, ref2, atol=1e-5, rtol=1e-5), (out2, ref2)

    # Case 3: larger batch -> multi-block grid (tb multiple of 128, 2 blocks).
    batch3 = 600
    reprs3 = jax.random.normal(kr, (batch3, pred_dim), dtype=jnp.float32)
    times3 = jax.random.uniform(kt, (batch3,), dtype=jnp.float32) * 10.0
    out3 = retriever_forward(params, reprs3, times3)
    jax.block_until_ready(out3)
    ref3 = retriever_reference(params, reprs3, times3)
    assert out3.shape == (batch3,)
    assert jnp.allclose(out3, ref3, atol=1e-5, rtol=1e-5), (out3, ref3)

    print("KERNEL_OK")
</pallas_src>

<mosaic_0001>
module attributes {stable_mosaic.version = 11 : i64} {
  func.func @retriever_kernel(%arg0: i32, %arg1: memref<16x63xf32, #tpu.memory_space<vmem>>, %arg2: memref<1x16xf32, #tpu.memory_space<vmem>>, %arg3: memref<32x63xf32, #tpu.memory_space<vmem>>, %arg4: memref<16x32xf32, #tpu.memory_space<vmem>>, %arg5: memref<8x16xf32, #tpu.memory_space<vmem>>, %arg6: memref<32x12xf32, #tpu.memory_space<vmem>>, %arg7: memref<1x16xf32, #tpu.memory_space<vmem>>) attributes {dimension_semantics = [#tpu.dimension_semantics<parallel>], iteration_bounds = array<i64: 1>, scalar_prefetch = 0 : i64, scratch_operands = 0 : i64, tpu.core_type = #tpu.core_type<tc>, window_params = [{transform_indices = @transform_0, window_bounds = array<i64: 16, 63>}, {transform_indices = @transform_1, window_bounds = array<i64: 1, 16>}, {pipeline_mode = #tpu.pipeline_mode<synchronous>, transform_indices = @transform_2, window_bounds = array<i64: 32, 63>}, {pipeline_mode = #tpu.pipeline_mode<synchronous>, transform_indices = @transform_3, window_bounds = array<i64: 16, 32>}, {pipeline_mode = #tpu.pipeline_mode<synchronous>, transform_indices = @transform_4, window_bounds = array<i64: 8, 16>}, {pipeline_mode = #tpu.pipeline_mode<synchronous>, transform_indices = @transform_5, window_bounds = array<i64: 32, 12>}, {transform_indices = @transform_6, window_bounds = array<i64: 1, 16>}]} {
    %c0 = arith.constant 0 : index
    %c0_0 = arith.constant 0 : index
    %0 = vector.load %arg1[%c0, %c0_0] : memref<16x63xf32, #tpu.memory_space<vmem>>, vector<16x63xf32>
    %c0_1 = arith.constant 0 : index
    %c0_2 = arith.constant 0 : index
    %1 = vector.load %arg2[%c0_1, %c0_2] : memref<1x16xf32, #tpu.memory_space<vmem>>, vector<1x16xf32>
    %c0_3 = arith.constant 0 : index
    %c0_4 = arith.constant 0 : index
    %2 = vector.load %arg6[%c0_3, %c0_4] : memref<32x12xf32, #tpu.memory_space<vmem>>, vector<32x1xf32>
    %c0_5 = arith.constant 0 : index
    %c1 = arith.constant 1 : index
    %3 = vector.load %arg6[%c0_5, %c1] : memref<32x12xf32, #tpu.memory_space<vmem>>, vector<32x1xf32>
    %c0_6 = arith.constant 0 : index
    %c2 = arith.constant 2 : index
    %4 = vector.load %arg6[%c0_6, %c2] : memref<32x12xf32, #tpu.memory_space<vmem>>, vector<32x1xf32>
    %c0_7 = arith.constant 0 : index
    %c3 = arith.constant 3 : index
    %5 = vector.load %arg6[%c0_7, %c3] : memref<32x12xf32, #tpu.memory_space<vmem>>, vector<32x1xf32>
    %c0_8 = arith.constant 0 : index
    %c4 = arith.constant 4 : index
    %6 = vector.load %arg6[%c0_8, %c4] : memref<32x12xf32, #tpu.memory_space<vmem>>, vector<16x1xf32>
    %c0_9 = arith.constant 0 : index
    %c5 = arith.constant 5 : index
    %7 = vector.load %arg6[%c0_9, %c5] : memref<32x12xf32, #tpu.memory_space<vmem>>, vector<16x1xf32>
    %c0_10 = arith.constant 0 : index
    %c6 = arith.constant 6 : index
    %8 = vector.load %arg6[%c0_10, %c6] : memref<32x12xf32, #tpu.memory_space<vmem>>, vector<16x1xf32>
    %c0_11 = arith.constant 0 : index
    %c7 = arith.constant 7 : index
    %9 = vector.load %arg6[%c0_11, %c7] : memref<32x12xf32, #tpu.memory_space<vmem>>, vector<8x1xf32>
    %c0_12 = arith.constant 0 : index
    %c8 = arith.constant 8 : index
    %10 = vector.load %arg6[%c0_12, %c8] : memref<32x12xf32, #tpu.memory_space<vmem>>, vector<8x1xf32>
    %c0_13 = arith.constant 0 : index
    %c9 = arith.constant 9 : index
    %11 = vector.load %arg6[%c0_13, %c9] : memref<32x12xf32, #tpu.memory_space<vmem>>, vector<8x1xf32>
    %c0_14 = arith.constant 0 : index
    %c10 = arith.constant 10 : index
    %12 = vector.load %arg6[%c0_14, %c10] : memref<32x12xf32, #tpu.memory_space<vmem>>, vector<8x1xf32>
    %c0_15 = arith.constant 0 : index
    %c11 = arith.constant 11 : index
    %13 = vector.load %arg6[%c0_15, %c11] : memref<32x12xf32, #tpu.memory_space<vmem>>, vector<1x1xf32>
    %c0_16 = arith.constant 0 : index
    %c0_17 = arith.constant 0 : index
    %14 = vector.load %arg3[%c0_16, %c0_17] : memref<32x63xf32, #tpu.memory_space<vmem>>, vector<32x63xf32>
    %cst = arith.constant dense<0.000000e+00> : vector<32x16xf32>
    %15 = tpu.matmul %14, %0, %cst {dimension_numbers = #tpu.dot_dimension_numbers<[1], [1], [0], [0], [0, 0, 1, 0], [], []>, precision = #tpu.contract_precision<fp32>} : vector<32x63xf32>, vector<16x63xf32>, vector<32x16xf32> -> vector<32x16xf32>
    %16 = vector.broadcast %2 : vector<32x1xf32> to vector<32x16xf32>
    %17 = vector.broadcast %1 : vector<1x16xf32> to vector<32x16xf32>
    %18 = arith.mulf %16, %17 : vector<32x16xf32>
    %19 = arith.addf %15, %18 : vector<32x16xf32>
    %20 = vector.broadcast %3 : vector<32x1xf32> to vector<32x16xf32>
    %21 = arith.addf %19, %20 : vector<32x16xf32>
    %cst_18 = arith.constant dense<0.000000e+00> : vector<16xf32>
    %22 = vector.multi_reduction <add>, %21, %cst_18 [0] : vector<32x16xf32> to vector<16xf32>
    %23 = vector.shape_cast %22 : vector<16xf32> to vector<1x16xf32>
    %cst_19 = arith.constant 3.200000e+01 : f32
    %24 = vector.broadcast %cst_19 : f32 to vector<1x16xf32>
    %25 = arith.divf %23, %24 : vector<1x16xf32>
    %26 = vector.broadcast %25 : vector<1x16xf32> to vector<32x16xf32>
    %27 = arith.subf %21, %26 : vector<32x16xf32>
    %28 = arith.mulf %27, %27 : vector<32x16xf32>
    %cst_20 = arith.constant dense<0.000000e+00> : vector<16xf32>
    %29 = vector.multi_reduction <add>, %28, %cst_20 [0] : vector<32x16xf32> to vector<16xf32>
    %30 = vector.shape_cast %29 : vector<16xf32> to vector<1x16xf32>
    %cst_21 = arith.constant 3.200000e+01 : f32
    %31 = vector.broadcast %cst_21 : f32 to vector<1x16xf32>
    %32 = arith.divf %30, %31 : vector<1x16xf32>
    %33 = vector.broadcast %25 : vector<1x16xf32> to vector<32x16xf32>
    %34 = arith.subf %21, %33 : vector<32x16xf32>
    %cst_22 = arith.constant 9.99999974E-6 : f32
    %35 = vector.broadcast %cst_22 : f32 to vector<1x16xf32>
    %36 = arith.addf %32, %35 : vector<1x16xf32>
    %37 = math.rsqrt %36 : vector<1x16xf32>
    %38 = vector.broadcast %37 : vector<1x16xf32> to vector<32x16xf32>
    %39 = arith.mulf %34, %38 : vector<32x16xf32>
    %40 = vector.broadcast %4 : vector<32x1xf32> to vector<32x16xf32>
    %41 = arith.mulf %39, %40 : vector<32x16xf32>
    %42 = vector.broadcast %5 : vector<32x1xf32> to vector<32x16xf32>
    %43 = arith.addf %41, %42 : vector<32x16xf32>
    %cst_23 = arith.constant 0.000000e+00 : f32
    %44 = vector.broadcast %cst_23 : f32 to vector<32x16xf32>
    %45 = arith.maximumf %43, %44 : vector<32x16xf32>
    %c0_24 = arith.constant 0 : index
    %c0_25 = arith.constant 0 : index
    %46 = vector.load %arg4[%c0_24, %c0_25] : memref<16x32xf32, #tpu.memory_space<vmem>>, vector<16x32xf32>
    %cst_26 = arith.constant dense<0.000000e+00> : vector<16x16xf32>
    %47 = tpu.matmul %46, %45, %cst_26 {dimension_numbers = #tpu.dot_dimension_numbers<[1], [0], [0], [1], [0, 0, 1, 1], [], []>, precision = #tpu.contract_precision<fp32>} : vector<16x32xf32>, vector<32x16xf32>, vector<16x16xf32> -> vector<16x16xf32>
    %48 = vector.broadcast %6 : vector<16x1xf32> to vector<16x16xf32>
    %49 = arith.addf %47, %48 : vector<16x16xf32>
    %cst_27 = arith.constant dense<0.000000e+00> : vector<16xf32>
    %50 = vector.multi_reduction <add>, %49, %cst_27 [0] : vector<16x16xf32> to vector<16xf32>
    %51 = vector.shape_cast %50 : vector<16xf32> to vector<1x16xf32>
    %cst_28 = arith.constant 1.600000e+01 : f32
    %52 = vector.broadcast %cst_28 : f32 to vector<1x16xf32>
    %53 = arith.divf %51, %52 : vector<1x16xf32>
    %54 = vector.broadcast %53 : vector<1x16xf32> to vector<16x16xf32>
    %55 = arith.subf %49, %54 : vector<16x16xf32>
    %56 = arith.mulf %55, %55 : vector<16x16xf32>
    %cst_29 = arith.constant dense<0.000000e+00> : vector<16xf32>
    %57 = vector.multi_reduction <add>, %56, %cst_29 [0] : vector<16x16xf32> to vector<16xf32>
    %58 = vector.shape_cast %57 : vector<16xf32> to vector<1x16xf32>
    %cst_30 = arith.constant 1.600000e+01 : f32
    %59 = vector.broadcast %cst_30 : f32 to vector<1x16xf32>
    %60 = arith.divf %58, %59 : vector<1x16xf32>
    %61 = vector.broadcast %53 : vector<1x16xf32> to vector<16x16xf32>
    %62 = arith.subf %49, %61 : vector<16x16xf32>
    %cst_31 = arith.constant 9.99999974E-6 : f32
    %63 = vector.broadcast %cst_31 : f32 to vector<1x16xf32>
    %64 = arith.addf %60, %63 : vector<1x16xf32>
    %65 = math.rsqrt %64 : vector<1x16xf32>
    %66 = vector.broadcast %65 : vector<1x16xf32> to vector<16x16xf32>
    %67 = arith.mulf %62, %66 : vector<16x16xf32>
    %68 = vector.broadcast %7 : vector<16x1xf32> to vector<16x16xf32>
    %69 = arith.mulf %67, %68 : vector<16x16xf32>
    %70 = vector.broadcast %8 : vector<16x1xf32> to vector<16x16xf32>
    %71 = arith.addf %69, %70 : vector<16x16xf32>
    %cst_32 = arith.constant 0.000000e+00 : f32
    %72 = vector.broadcast %cst_32 : f32 to vector<16x16xf32>
    %73 = arith.maximumf %71, %72 : vector<16x16xf32>
    %c0_33 = arith.constant 0 : index
    %c0_34 = arith.constant 0 : index
    %74 = vector.load %arg5[%c0_33, %c0_34] : memref<8x16xf32, #tpu.memory_space<vmem>>, vector<8x16xf32>
    %cst_35 = arith.constant dense<0.000000e+00> : vector<8x16xf32>
    %75 = tpu.matmul %74, %73, %cst_35 {dimension_numbers = #tpu.dot_dimension_numbers<[1], [0], [0], [1], [0, 0, 1, 1], [], []>, precision = #tpu.contract_precision<fp32>} : vector<8x16xf32>, vector<16x16xf32>, vector<8x16xf32> -> vector<8x16xf32>
    %76 = vector.broadcast %9 : vector<8x1xf32> to vector<8x16xf32>
    %77 = arith.addf %75, %76 : vector<8x16xf32>
    %cst_36 = arith.constant dense<0.000000e+00> : vector<16xf32>
    %78 = vector.multi_reduction <add>, %77, %cst_36 [0] : vector<8x16xf32> to vector<16xf32>
    %79 = vector.shape_cast %78 : vector<16xf32> to vector<1x16xf32>
    %cst_37 = arith.constant 8.000000e+00 : f32
    %80 = vector.broadcast %cst_37 : f32 to vector<1x16xf32>
    %81 = arith.divf %79, %80 : vector<1x16xf32>
    %82 = vector.broadcast %81 : vector<1x16xf32> to vector<8x16xf32>
    %83 = arith.subf %77, %82 : vector<8x16xf32>
    %84 = arith.mulf %83, %83 : vector<8x16xf32>
    %cst_38 = arith.constant dense<0.000000e+00> : vector<16xf32>
    %85 = vector.multi_reduction <add>, %84, %cst_38 [0] : vector<8x16xf32> to vector<16xf32>
    %86 = vector.shape_cast %85 : vector<16xf32> to vector<1x16xf32>
    %cst_39 = arith.constant 8.000000e+00 : f32
    %87 = vector.broadcast %cst_39 : f32 to vector<1x16xf32>
    %88 = arith.divf %86, %87 : vector<1x16xf32>
    %89 = vector.broadcast %81 : vector<1x16xf32> to vector<8x16xf32>
    %90 = arith.subf %77, %89 : vector<8x16xf32>
    %cst_40 = arith.constant 9.99999974E-6 : f32
    %91 = vector.broadcast %cst_40 : f32 to vector<1x16xf32>
    %92 = arith.addf %88, %91 : vector<1x16xf32>
    %93 = math.rsqrt %92 : vector<1x16xf32>
    %94 = vector.broadcast %93 : vector<1x16xf32> to vector<8x16xf32>
    %95 = arith.mulf %90, %94 : vector<8x16xf32>
    %96 = vector.broadcast %10 : vector<8x1xf32> to vector<8x16xf32>
    %97 = arith.mulf %95, %96 : vector<8x16xf32>
    %98 = vector.broadcast %11 : vector<8x1xf32> to vector<8x16xf32>
    %99 = arith.addf %97, %98 : vector<8x16xf32>
    %cst_41 = arith.constant 0.000000e+00 : f32
    %100 = vector.broadcast %cst_41 : f32 to vector<8x16xf32>
    %101 = arith.maximumf %99, %100 : vector<8x16xf32>
    %cst_42 = arith.constant dense<0.000000e+00> : vector<1x16xf32>
    %102 = tpu.matmul %12, %101, %cst_42 {dimension_numbers = #tpu.dot_dimension_numbers<[0], [0], [1], [1], [0, 1, 1, 1], [], []>, precision = #tpu.contract_precision<fp32>} : vector<8x1xf32>, vector<8x16xf32>, vector<1x16xf32> -> vector<1x16xf32>
    %103 = vector.broadcast %13 : vector<1x1xf32> to vector<1x16xf32>
    %104 = arith.addf %102, %103 : vector<1x16xf32>
    %105 = arith.negf %104 : vector<1x16xf32>
    %106 = math.exp %105 : vector<1x16xf32>
    %cst_43 = arith.constant 1.000000e+00 : f32
    %107 = vector.broadcast %cst_43 : f32 to vector<1x16xf32>
    %108 = arith.addf %107, %106 : vector<1x16xf32>
    %109 = arith.divf %107, %108 : vector<1x16xf32>
    %c0_44 = arith.constant 0 : index
    %c0_45 = arith.constant 0 : index
    %110 = vector.load %arg7[%c0_44, %c0_45] : memref<1x16xf32, #tpu.memory_space<vmem>>, vector<1x16xf32>
    tpu.vector_store %arg7[%c0_44, %c0_45], %109 {strides = array<i32>} : memref<1x16xf32, #tpu.memory_space<vmem>>, vector<1x16xf32>,
    return
  }
  func.func @transform_0(%arg0: i32) -> (i32, i32) {
    %c0_i32 = arith.constant 0 : i32
    %c0_i32_0 = arith.constant 0 : i32
    return %arg0, %c0_i32 : i32, i32
  }
  func.func @transform_1(%arg0: i32) -> (i32, i32) {
    %c0_i32 = arith.constant 0 : i32
    %c0_i32_0 = arith.constant 0 : i32
    return %c0_i32, %arg0 : i32, i32
  }
  func.func @transform_2(%arg0: i32) -> (i32, i32) {
    %c0_i32 = arith.constant 0 : i32
    %c0_i32_0 = arith.constant 0 : i32
    %c0_i32_1 = arith.constant 0 : i32
    return %c0_i32, %c0_i32_0 : i32, i32
  }
  func.func @transform_3(%arg0: i32) -> (i32, i32) {
    %c0_i32 = arith.constant 0 : i32
    %c0_i32_0 = arith.constant 0 : i32
    %c0_i32_1 = arith.constant 0 : i32
    return %c0_i32, %c0_i32_0 : i32, i32
  }
  func.func @transform_4(%arg0: i32) -> (i32, i32) {
    %c0_i32 = arith.constant 0 : i32
    %c0_i32_0 = arith.constant 0 : i32
    %c0_i32_1 = arith.constant 0 : i32
    return %c0_i32, %c0_i32_0 : i32, i32
  }
  func.func @transform_5(%arg0: i32) -> (i32, i32) {
    %c0_i32 = arith.constant 0 : i32
    %c0_i32_0 = arith.constant 0 : i32
    %c0_i32_1 = arith.constant 0 : i32
    return %c0_i32, %c0_i32_0 : i32, i32
  }
  func.func @transform_6(%arg0: i32) -> (i32, i32) {
    %c0_i32 = arith.constant 0 : i32
    %c0_i32_0 = arith.constant 0 : i32
    return %c0_i32, %arg0 : i32, i32
  }
}

</mosaic_0001>

<bundles_post_ra>
// kernel: tpu_custom_call.1
= control target key start
LH: loop header
LB: loop body
LE: loop exit
PB: predicated region body
PF: predicated region fallthrough
CT: control target
= control target key end

     0   :  { %11 = vsyncpa [#allocation3], 0  ;;  %s3295_s0 = inlined_call_operand.vmem [shape: f32[16,63], index: 0, kind: input, shape index: {}]   ;;  %s3296_s1 = inlined_call_operand.vmem [shape: f32[1,16], index: 1, kind: input, shape index: {}]   ;;  %s3297_s2 = inlined_call_operand.vmem [shape: f32[32,63], index: 2, kind: input, shape index: {}]   ;;  %s3298_s3 = inlined_call_operand.hbm [shape: f32[16,32], index: 3, kind: input, shape index: {}]   ;;  %s3299_s4 = inlined_call_operand.hbm [shape: f32[8,16], index: 4, kind: input, shape index: {}]   ;;  %s3300_s5 = inlined_call_operand.vmem [shape: f32[32,12], index: 5, kind: input, shape index: {}]   ;;  %s3301_s6 = inlined_call_operand.hbm [shape: f32[1,16], index: 6, kind: output, shape index: {}]  }
   0x1   :  { %12 = vsyncpa [#allocation6], 0 }
   0x2   :  { %13 = vsyncpa [#allocation4], 0  ;;  %s2988_s21 = smov [#allocation2]   ;;  %s2916_s25 = scalar_lea.hbm %s3298_s3, 256 }
   0x3   :  { %s25_s22 = sshll.u32 %s2988_s21, 4  ;;  %p2917_p0 = scmp.ne.s32.totalorder %s3298_s3, %s2916_s25  ;;  %s26_s22 = int_to_ptr.vmem [resolvable:$true] %s25_s22 }
   0x4   :  { %p2920_p1 = scmp.lt.u32.totalorder %s2916_s25, %s3298_s3 }
   0x6   :  { %p2922_p2 = pnand %p2920_p1, %p2917_p0 }
   0x8   :  { %2925 = shalt.err (!%p2922_p2)
}
   0x9   :  { %s2926_s30 = scalar_lea.vmem %s26_s22, 256  ;;  %p2931_p4 = scmp.lt.s32.totalorder %s26_s22, %s26_s22 }
   0xa   :  { %p2927_p3 = scmp.ne.s32.totalorder %s26_s22, %s2926_s30  ;;  %p2932_p5 = scmp.lt.s32.totalorder %s2926_s30, %s2926_s30 }
   0xc   :  { %p2933_p6 = por %p2932_p5, %p2931_p4 }
   0xe   :  { %p2934_p7 = pnand %p2933_p6, %p2927_p3 }
  0x10   :  { %2937 = shalt.err (!%p2934_p7)
}
  0x11   :  { %s2989_s7 = smov 128   ;;  %s2990_s8 = smov 8  }
  0x12   :  { %31 = dma.hbm_to_vmem [thread:$0]  %s3298_s3, 256, %s26_s22, [#allocation3], %s2989_s7, %s2989_s7, %s2990_s8  }
  0x13   :  { %s2991_s11 = smov [#allocation5]   ;;  %s2938_s15 = scalar_lea.hbm %s3299_s4, 128 }
  0x14   :  { %s38_s12 = sshll.u32 %s2991_s11, 4  ;;  %p2939_p8 = scmp.ne.s32.totalorder %s3299_s4, %s2938_s15  ;;  %s39_s12 = int_to_ptr.vmem [resolvable:$true] %s38_s12 }
  0x15   :  { %p2942_p9 = scmp.lt.u32.totalorder %s2938_s15, %s3299_s4 }
  0x17   :  { %p2944_p10 = pnand %p2942_p9, %p2939_p8 }
  0x19   :  { %2947 = shalt.err (!%p2944_p10)
}
  0x1a   :  { %s2948_s20 = scalar_lea.vmem %s39_s12, 128  ;;  %p2953_p12 = scmp.lt.s32.totalorder %s39_s12, %s39_s12 }
  0x1b   :  { %p2949_p11 = scmp.ne.s32.totalorder %s39_s12, %s2948_s20  ;;  %p2954_p13 = scmp.lt.s32.totalorder %s2948_s20, %s2948_s20 }
  0x1d   :  { %p2955_p0 = por %p2954_p13, %p2953_p12 }
  0x1f   :  { %p2956_p1 = pnand %p2955_p0, %p2949_p11 }
  0x21   :  { %2959 = shalt.err (!%p2956_p1)
}
  0x22   :  { %41 = dma.hbm_to_vmem [thread:$0]  %s3299_s4, 128, %s39_s12, [#allocation6]  }
  0x23   :  { %2982 = dma.done.wait [#allocation3], 256  }
  0x24   :  { %2983 = vsyncadd [#allocation3], 4294967040 }
  0x25   :  { %2984 = dma.done.wait [#allocation6], 128  }
  0x26   :  { %2985 = vsyncadd [#allocation6], 4294967168  ;;  %v2992_v0 = vmov 0   ;;  %vm92_vm0 = vcmask 515072   ;;  %v50_v1 = vld [vmem:[%s3295_s0] sm:$0xff]  ;;  %v51_v2 = vld [vmem:[%s3295_s0 + $0x8] sm:$0xff] }
  0x27   :  { %2888 = vset.pattern.permute.xlu1 %v2992_v0  ;;  %2887 = vset.pattern.permute.xlu0 %v2992_v0  ;;  %v58_v3 = vld [vmem:[%s3297_s2] sm:$0xff]  ;;  %v106_v4 = vsel %vm92_vm0, %v50_v1, 0  ;;  %v109_v5 = vsel %vm92_vm0, %v51_v2, 0  ;;  %v59_v7 = vld [vmem:[%s3297_s2 + $0x8] sm:$0xff]  ;;  %v60_v8 = vld [vmem:[%s3297_s2 + $0x10] sm:$0xff]  ;;  %v2993_v46 = vmov 1  }
  0x28   :  { %v94_v6 = vsel %vm92_vm0, %v58_v3, 0  ;;  %v61_v9 = vld [vmem:[%s3297_s2 + $0x18] sm:$0xff]  ;;  %v112_v10 = vand.u32 4294901760, %v106_v4  ;;  %v115_v11 = vand.u32 4294901760, %v109_v5  ;;  %v97_v13 = vsel %vm92_vm0, %v59_v7, 0  ;;  %v3094_v14 = vld [vmem:[%s3300_s5 + $0x10] sm:$0xff] }
  0x29   :  { %v3088_v12 = vand.u32 4294901760, %v94_v6  ;;  %v3099_v15 = vld [vmem:[%s3300_s5] sm:$0xff]  ;;  %v3101_v16 = vand.u32 4294901760, %v97_v13  ;;  %v100_v17 = vsel %vm92_vm0, %v60_v8, 0  ;;  %v103_v18 = vsel %vm92_vm0, %v61_v9, 0  ;;  %74 = vperm.xlu1 %2888, %v3094_v14   ;;  %v3117_v23 = vld [vmem:[%s3300_s5 + $0x18] sm:$0xff] }
  0x2a   :  { %64 = vperm.xlu0 %2887, %v3099_v15   ;;  %v3107_v19 = vpack.c.bf16 %v115_v11, %v112_v10  ;;  %v3112_v21 = vsub.f32 %v106_v4, %v112_v10  ;;  %v227_v22 = vsub.f32 %v109_v5, %v115_v11  ;;  %v3122_v25 = vand.u32 4294901760, %v100_v17  ;;  %v3129_v27 = vld [vmem:[%s3300_s5 + $0x8] sm:$0xff]  ;;  %v807_v54 = vld [vmem:[#allocation2] sm:$0xff] }
  0x2b   :  { %v3110_v20 = vsub.f32 %v94_v6, %v3088_v12  ;;  %v3120_v24 = vsub.f32 %v97_v13, %v3101_v16  ;;  %v3124_v26 = vand.u32 4294901760, %v103_v18  ;;  %v2994_v51 = vmov 2   ;;  %v2417_v1 = vld [vmem:[%s3296_s1] ss:$0 sm:$0xff]  ;;  %s3002_s1 = smov 118  }
  0x2c   :  { %2720 = vmatprep.subr.bf16.mxu0 %v3107_v19  ;;  %v221_v29 = vand.u32 4294901760, %v3112_v21  ;;  %v228_v30 = vand.u32 4294901760, %v227_v22  ;;  %v3137_v32 = vsub.f32 %v100_v17, %v3122_v25  ;;  %v2727_v48 = vpack.c.bf16 %v227_v22, %v3112_v21 }
  0x2d   :  { %v180_v28 = vand.u32 4294901760, %v3110_v20  ;;  %2722 = vmatpush3.bf16.xpose.msra.mxu0 %v3107_v19  ;;  %v190_v31 = vand.u32 4294901760, %v3120_v24  ;;  %v3140_v33 = vsub.f32 %v103_v18, %v3124_v26  ;;  %79 = vperm.xlu1 %2888, %v3117_v23   ;;  %v2995_v52 = vmov 3  }
  0x2e   :  { %v222_v35 = vsub.f32 %v3112_v21, %v221_v29  ;;  %v229_v36 = vsub.f32 %v227_v22, %v228_v30  ;;  %69 = vperm.xlu0 %2887, %v3129_v27   ;;  %v200_v38 = vand.u32 4294901760, %v3137_v32  ;;  %v2735_v53 = vpack.c.bf16 %v228_v30, %v221_v29 }
  0x2f   :  { %v181_v34 = vsub.f32 %v3110_v20, %v180_v28  ;;  %v191_v37 = vsub.f32 %v3120_v24, %v190_v31  ;;  %v210_v39 = vand.u32 4294901760, %v3140_v33  ;;  %vm817_vm1 = vcmask 261120  }
  0x30   :  { %v223_v41 = vand.u32 4294901760, %v222_v35  ;;  %v230_v42 = vand.u32 4294901760, %v229_v36  ;;  %v201_v44 = vsub.f32 %v3137_v32, %v200_v38  ;;  %v819_v55 = vsel %vm817_vm1, %v807_v54, 0 }
  0x31   :  { %v182_v40 = vand.u32 4294901760, %v181_v34  ;;  %v192_v43 = vand.u32 4294901760, %v191_v37  ;;  %v211_v45 = vsub.f32 %v3140_v33, %v210_v39  ;;  %2890 = vset.pattern.permute.xlu1 %v2993_v46  ;;  %v3189_v56 = vand.u32 4294901760, %v819_v55 }
  0x32   :  { %v2723_v47 = vpack.c.bf16 %v230_v42, %v223_v41  ;;  %704 = vperm.xlu1 %2890, %v3129_v27   ;;  %v202_v49 = vand.u32 4294901760, %v201_v44  ;;  %2889 = vset.pattern.permute.xlu0 %v2993_v46  ;;  %v2996_v6 = vmov 4   ;;  %vm719_vm2 = vcmask 130048  }
  0x33   :  { %2525 = vmatprep.mubr.f32.mxu0 %v182_v40  ;;  %v212_v50 = vand.u32 4294901760, %v211_v45  ;;  %700 = vperm.xlu0 %2889, %v3099_v15   ;;  %v3192_v57 = vsub.f32 %v819_v55, %v3189_v56  ;;  %v2997_v21 = vmov 5   ;;  %v2998_v22 = vmov 6  }
  0x34   :  { %2526 = vmatmul.mubr.f32.vlgmr.msra.gmra.mrb[0].mxu0 %v192_v43  ;;  %2724 = vmatprep.subr.bf16.mxu0 %v2723_v47  ;;  %vm3000_vm3 = vmmov 0   ;;  %vm1943_vm4 = vcmask 64512   ;;  %vm2399_vm5 = vcmask 122880  }
  0x35   :  { %2726 = vmatpush3.bf16.xpose.msra.mxu0 %v2723_v47  ;;  %2528 = vmatprep.mubr.f32.mxu0 %v202_v49  ;;  %v895_v58 = vand.u32 4294901760, %v3192_v57 }
  0x36   :  { %2728 = vmatprep.subr.bf16.mxu0 %v2727_v48  ;;  %708 = vperm.xlu1 %2890, %v3094_v14  }
  0x37   :  { %712 = vperm.xlu0 %2889, %v3117_v23   ;;  %v896_v59 = vsub.f32 %v3192_v57, %v895_v58 }
  0x38   :  { %2529 = vmatmul.mubr.f32.gmra.mrb[2].mxu0 %v212_v50 }
  0x39   :  { %2535 = vmatprep.mubr.f32.mxu0 %v3088_v12  ;;  %v897_v60 = vand.u32 4294901760, %v896_v59 }
  0x3a   :  { %2891 = vset.pattern.permute.xlu1 %v2994_v51 }
  0x3b   :  { %764 = vperm.xlu1 %2891, %v3099_v15   ;;  %2892 = vset.pattern.permute.xlu0 %v2994_v51 }
  0x3c   :  { %2536 = vmatmul.mubr.f32.vlgmr.msra.gmra.mrb[0].mxu0 %v3101_v16  ;;  %768 = vperm.xlu0 %2892, %v3129_v27  }
  0x3d   :  { %2730 = vmatpush3.bf16.xpose.msra.mxu0 %v2727_v48  ;;  %2538 = vmatprep.mubr.f32.mxu0 %v3122_v25 }
  0x3e   :  { %2732 = vmatprep.subr.bf16.mxu0 %v3107_v19  ;;  %2589 = vmatprep.mubr.f32.mxu1 %v897_v60 }
  0x3f   :  { %2893 = vset.pattern.permute.xlu1 %v2995_v52 }
  0x40   :  { %2539 = vmatmul.mubr.f32.gmra.mrb[2].mxu0 %v3124_v26  ;;  %784 = vperm.xlu1 %2893, %v3099_v15  }
  0x41   :  { %2545 = vmatprep.mubr.f32.mxu0 %v3110_v20  ;;  %772 = vperm.xlu0 %2892, %v3094_v14  }
  0x44   :  { %2546 = vmatmul.mubr.f32.vlgmr.msra.gmra.mrb[0].mxu0 %v3120_v24  ;;  %788 = vperm.xlu1 %2893, %v3129_v27  }
  0x45   :  { %2734 = vmatpush3.bf16.xpose.msra.mxu0 %v3107_v19  ;;  %2548 = vmatprep.mubr.f32.mxu0 %v3137_v32 }
  0x46   :  { %2736 = vmatprep.subr.bf16.mxu0 %v2735_v53  ;;  %2895 = vset.pattern.permute.xlu0 %v2995_v52 }
  0x47   :  { %792 = vperm.xlu0 %2895, %v3094_v14  }
  0x48   :  { %2549 = vmatmul.mubr.f32.gmra.mrb[2].mxu0 %v3140_v33  ;;  %2894 = vset.pattern.permute.xlu1 %v2994_v51 }
  0x49   :  { %2555 = vmatprep.mubr.f32.mxu0 %v180_v28  ;;  %776 = vperm.xlu1 %2894, %v3117_v23  }
  0x4b   :  { %2898 = vset.pattern.permute.xlu0 %v2996_v6 }
  0x4c   :  { %2556 = vmatmul.mubr.f32.vlgmr.msra.gmra.mrb[0].mxu0 %v190_v31  ;;  %814 = vperm.xlu0 %2898, %v3129_v27  }
  0x4d   :  { %2738 = vmatpush3.bf16.xpose.msra.mxu0 %v2735_v53  ;;  %2558 = vmatprep.mubr.f32.mxu0 %v200_v38 }
  0x4e   :  { %2740 = vmatprep.subr.bf16.mxu0 %v3107_v19  ;;  %2896 = vset.pattern.permute.xlu1 %v2995_v52 }
  0x4f   :  { %796 = vperm.xlu1 %2896, %v3117_v23  }
  0x50   :  { %2559 = vmatmul.mubr.f32.gmra.mrb[2].mxu0 %v210_v39  ;;  %2900 = vset.pattern.permute.xlu0 %v2998_v22 }
  0x51   :  { %2565 = vmatprep.mubr.f32.mxu0 %v3088_v12  ;;  %1392 = vperm.xlu0 %2900, %v3099_v15  }
  0x53   :  { %2897 = vset.pattern.permute.xlu1 %v2996_v6  ;;  %v808_v6 = vld [vmem:[#allocation2 + $0x8] sm:$0xff] }
  0x54   :  { %2566 = vmatmul.mubr.f32.vlgmr.msra.gmra.mrb[0].mxu0 %v3101_v16  ;;  %810 = vperm.xlu1 %2897, %v3099_v15  }
  0x55   :  { %2742 = vmatpush3.bf16.xpose.msra.mxu0 %v3107_v19  ;;  %2568 = vmatprep.mubr.f32.mxu0 %v3122_v25 }
  0x56   :  { %1908 = vrot.lane.b32.xlu0 %v3099_v15, %s3002_s1 }
  0x58   :  { %2569 = vmatmul.mubr.f32.gmra.mrb[2].mxu0 %v3124_v26  ;;  %2899 = vset.pattern.permute.xlu1 %v2997_v21 }
  0x59   :  { %2575 = vmatprep.mubr.f32.mxu0 %v3088_v12  ;;  %1382 = vperm.xlu1 %2899, %v3099_v15  }
  0x5c   :  { %2576 = vmatmul.mubr.f32.vlgmr.msra.gmra.mrb[0].mxu0 %v3101_v16 }
  0x5d   :  { %2578 = vmatprep.mubr.f32.mxu0 %v3122_v25  ;;  %1386 = vperm.xlu1 %2899, %v3129_v27  }
  0x60   :  { %2579 = vmatmul.mubr.f32.gmra.mrb[2].mxu0 %v3124_v26 }
  0x61   :  { %2901 = vset.pattern.permute.xlu1 %v2998_v22 }
  0x62   :  { %1396 = vperm.xlu1 %2901, %v3129_v27  }
  0xa8   :  { %v75_v62 = vpop.permute.xlu1 %74 }
  0xa9   :  { %v65_v61 = vpop.permute.xlu0 %64  ;;  %v90_v13 = vmul.f32 %v2417_v1, %v75_v62 }
  0xaa   :  { %v88_v4 = vmul.f32 %v2417_v1, %v65_v61 }
  0xac   :  { %v80_v0 = vpop.permute.xlu1 %79 }
  0xad   :  { %v70_v63 = vpop.permute.xlu0 %69  ;;  %v91_v11 = vmul.f32 %v2417_v1, %v80_v0 }
  0xae   :  { %v89_v2 = vmul.f32 %v2417_v1, %v70_v63 }
  0xb1   :  { %v705_v7 = vpop.permute.xlu1 %704 }
  0xb2   :  { %v701_v3 = vpop.permute.xlu0 %700 }
  0xb5   :  { %v709_v26 = vpop.permute.xlu1 %708 }
  0xb6   :  { %v713_v19 = vpop.permute.xlu0 %712 }
  0xba   :  { %v765_v61 = vpop.permute.xlu1 %764 }
 0x12f   :  { %v2577_v5 = vpop.f32.mrb[0].mxu0 }
 0x130   :  { %v2809_v8 = vadd.f32 %v2577_v5, %v89_v2  ;;  %v677_v9 = vpop.f32.mrb[1].mxu0  ;;  %v785_v2 = vpop.permute.xlu1 %784 }
 0x131   :  { %v2810_v10 = vadd.f32 %v677_v9, %v88_v4  ;;  %v769_v4 = vpop.permute.xlu0 %768  ;;  %v822_v9 = vsel %vm817_vm1, %v808_v6, 0 }
 0x132   :  { %v716_v12 = vadd.f32 %v2809_v8, %v705_v7 }
 0x133   :  { %v715_v14 = vadd.f32 %v2810_v10, %v701_v3  ;;  %v2580_v16 = vpop.f32.mrb[2].mxu0 }
 0x134   :  { %v721_v17 = vsel %vm719_vm2, %v716_v12, 0.0  ;;  %v2811_v18 = vadd.f32 %v2580_v16, %v91_v11  ;;  %v689_v20 = vpop.f32.mrb[3].mxu0  ;;  %v789_v5 = vpop.permute.xlu1 %788  ;;  %v3216_v11 = vand.u32 4294901760, %v822_v9 }
 0x135   :  { %v720_v23 = vsel %vm719_vm2, %v715_v14, 0.0  ;;  %v2812_v24 = vadd.f32 %v689_v20, %v90_v13  ;;  %v773_v7 = vpop.permute.xlu0 %772 }
 0x136   :  { %v722_v25 = vadd.f32 %v721_v17, %v720_v23  ;;  %v718_v28 = vadd.f32 %v2811_v18, %v713_v19  ;;  %v3219_v23 = vsub.f32 %v822_v9, %v3216_v11 }
 0x137   :  { %v717_v29 = vadd.f32 %v2812_v24, %v709_v26 }
 0x138   :  { %v725_v32 = vsel %vm719_vm2, %v718_v28, 0.0  ;;  %v777_v8 = vpop.permute.xlu1 %776 }
 0x139   :  { %v723_v30 = vsel %vm719_vm2, %v717_v29, 0.0  ;;  %v793_v18 = vpop.permute.xlu0 %792 }
 0x13a   :  { %v724_v31 = vadd.f32 %v723_v30, %v722_v25 }
 0x13c   :  { %v726_v33 = vadd.f32 %v725_v32, %v724_v31  ;;  %v797_v17 = vpop.permute.xlu1 %796 }
 0x13e   :  { %v727_v34 = vrot.slane %v726_v33, 4 }
 0x140   :  { %v728_v35 = vadd.f32 %v727_v34, %v726_v33  ;;  %v905_v33 = vand.u32 4294901760, %v3219_v23 }
 0x142   :  { %v729_v36 = vrot.slane %v728_v35, 2 }
 0x144   :  { %v730_v37 = vadd.f32 %v729_v36, %v728_v35 }
 0x146   :  { %v731_v38 = vrot.slane %v730_v37, 1 }
 0x148   :  { %v732_v39 = vadd.f32 %v731_v38, %v730_v37 }
 0x14a   :  { %v734_v40 = vmul.f32 0.03125, %v732_v39 }
 0x14c   :  { %v737_v41 = vsub.f32 %v717_v29, %v734_v40  ;;  %v738_v42 = vsub.f32 %v718_v28, %v734_v40  ;;  %v735_v43 = vsub.f32 %v715_v14, %v734_v40  ;;  %v736_v44 = vsub.f32 %v716_v12, %v734_v40 }
 0x14e   :  { %v741_v45 = vmul.f32 %v737_v41, %v737_v41  ;;  %v739_v46 = vmul.f32 %v735_v43, %v735_v43  ;;  %v740_v47 = vmul.f32 %v736_v44, %v736_v44  ;;  %v742_v48 = vmul.f32 %v738_v42, %v738_v42 }
 0x150   :  { %v743_v49 = vsel %vm719_vm2, %v739_v46, 0.0  ;;  %v744_v50 = vsel %vm719_vm2, %v740_v47, 0.0  ;;  %v746_v27 = vsel %vm719_vm2, %v741_v45, 0.0  ;;  %v748_v53 = vsel %vm719_vm2, %v742_v48, 0.0 }
 0x151   :  { %v745_v51 = vadd.f32 %v744_v50, %v743_v49 }
 0x153   :  { %v747_v52 = vadd.f32 %v746_v27, %v745_v51 }
 0x155   :  { %v749_v54 = vadd.f32 %v748_v53, %v747_v52 }
 0x157   :  { %v750_v55 = vrot.slane %v749_v54, 4 }
 0x159   :  { %v751_v59 = vadd.f32 %v750_v55, %v749_v54 }
 0x15b   :  { %v752_v60 = vrot.slane %v751_v59, 2 }
 0x15d   :  { %v753_v62 = vadd.f32 %v752_v60, %v751_v59 }
 0x15f   :  { %v754_v63 = vrot.slane %v753_v62, 1 }
 0x161   :  { %v755_v0 = vadd.f32 %v754_v63, %v753_v62 }
 0x163   :  { %v756_v1 = vmul.f32 0.03125, %v755_v0 }
 0x165   :  { %v757_v3 = vadd.f32 1e-05, %v756_v1 }
 0x167   :  { %2906 = vrsqrt.f32 %v757_v3  ;;  %v3005_v3 = vmov 8  }
 0x171   :  { %v2907_v10 = vpop.eup %2906 }
 0x172   :  { %v759_v12 = vmul.f32 %v2907_v10, %v735_v43  ;;  %v760_v13 = vmul.f32 %v2907_v10, %v736_v44  ;;  %v761_v14 = vmul.f32 %v2907_v10, %v737_v41  ;;  %v762_v16 = vmul.f32 %v2907_v10, %v738_v42 }
 0x173   :  { %v906_v44 = vsub.f32 %v3219_v23, %v905_v33 }
 0x174   :  { %v779_v19 = vmul.f32 %v765_v61, %v759_v12  ;;  %v780_v20 = vmul.f32 %v769_v4, %v760_v13  ;;  %v781_v21 = vmul.f32 %v773_v7, %v761_v14  ;;  %v782_v22 = vmul.f32 %v777_v8, %v762_v16  ;;  %v815_v4 = vpop.permute.xlu0 %814 }
 0x175   :  { %v907_v59 = vand.u32 4294901760, %v906_v44 }
 0x176   :  { %v799_v24 = vadd.f32 %v785_v2, %v779_v19  ;;  %v800_v25 = vadd.f32 %v789_v5, %v780_v20  ;;  %v802_v26 = vadd.f32 %v797_v17, %v782_v22  ;;  %v801_v28 = vadd.f32 %v793_v18, %v781_v21  ;;  %v811_v5 = vpop.permute.xlu1 %810 }
 0x177   :  { %v3004_v2 = vmov 9  }
 0x178   :  { %v803_v29 = vmax.f32 %v799_v24, 0.0  ;;  %v804_v30 = vmax.f32 %v800_v25, 0.0  ;;  %v806_v31 = vmax.f32 %v802_v26, 0.0  ;;  %v805_v32 = vmax.f32 %v801_v28, 0.0  ;;  %2904 = vset.pattern.permute.xlu0 %v3004_v2 }
 0x179   :  { %1898 = vperm.xlu0 %2904, %v3099_v15  }
 0x17a   :  { %v825_v34 = vand.u32 4294901760, %v803_v29  ;;  %v828_v35 = vand.u32 4294901760, %v804_v30  ;;  %v834_v36 = vand.u32 4294901760, %v806_v31  ;;  %v831_v37 = vand.u32 4294901760, %v805_v32 }
 0x17c   :  { %v915_v38 = vsub.f32 %v803_v29, %v825_v34  ;;  %v2743_v39 = vpack.c.bf16 %v828_v35, %v825_v34  ;;  %v922_v40 = vsub.f32 %v804_v30, %v828_v35  ;;  %v936_v41 = vsub.f32 %v806_v31, %v834_v36 }
 0x17d   :  { %v2747_v42 = vpack.c.bf16 %v834_v36, %v831_v37  ;;  %v929_v43 = vsub.f32 %v805_v32, %v831_v37  ;;  %v1403_v36 = vld [vmem:[#allocation5] sm:$0xff]  ;;  %v1383_v37 = vpop.permute.xlu1 %1382 }
 0x17e   :  { %v916_v45 = vand.u32 4294901760, %v915_v38  ;;  %v937_v46 = vand.u32 4294901760, %v936_v41  ;;  %2744 = vmatprep.subr.bf16.mxu1 %v2743_v39  ;;  %v923_v47 = vand.u32 4294901760, %v922_v40  ;;  %v2759_v48 = vpack.c.bf16 %v922_v40, %v915_v38 }
 0x17f   :  { %v930_v49 = vand.u32 4294901760, %v929_v43  ;;  %2746 = vmatpush3.bf16.msra.mxu1 %v2743_v39  ;;  %v2763_v50 = vpack.c.bf16 %v936_v41, %v929_v43 }
 0x180   :  { %2748 = vmatprep.subr.bf16.mxu1 %v2747_v42  ;;  %v917_v51 = vsub.f32 %v915_v38, %v916_v45  ;;  %v924_v27 = vsub.f32 %v922_v40, %v923_v47  ;;  %v938_v52 = vsub.f32 %v936_v41, %v937_v46  ;;  %v2775_v53 = vpack.c.bf16 %v923_v47, %v916_v45 }
 0x181   :  { %v931_v54 = vsub.f32 %v929_v43, %v930_v49  ;;  %v2779_v55 = vpack.c.bf16 %v937_v46, %v930_v49  ;;  %v1409_v38 = vsel %vm719_vm2, %v1403_v36, 0  ;;  %v1387_v40 = vpop.permute.xlu1 %1386  ;;  %v1393_v46 = vpop.permute.xlu0 %1392 }
 0x182   :  { %v918_v60 = vand.u32 4294901760, %v917_v51  ;;  %v925_v61 = vand.u32 4294901760, %v924_v27  ;;  %v939_v62 = vand.u32 4294901760, %v938_v52 }
 0x183   :  { %2750 = vmatpush3.bf16.msra.mxu1 %v2747_v42  ;;  %v932_v63 = vand.u32 4294901760, %v931_v54 }
 0x184   :  { %v2751_v0 = vpack.c.bf16 %v925_v61, %v918_v60 }
 0x185   :  { %v2755_v1 = vpack.c.bf16 %v939_v62, %v932_v63  ;;  %v1397_v45 = vpop.permute.xlu1 %1396 }
 0x186   :  { %2590 = vmatmul.mubr.f32.vlgmr.msra.gmra.mrb[0].mxu1 %v907_v59  ;;  %2752 = vmatprep.subr.bf16.mxu1 %v2751_v0 }
 0x187   :  { %2754 = vmatpush3.bf16.msra.mxu1 %v2751_v0  ;;  %2600 = vmatprep.mubr.f32.mxu1 %v3189_v56 }
 0x188   :  { %2756 = vmatprep.subr.bf16.mxu1 %v2755_v1 }
 0x18b   :  { %2758 = vmatpush3.bf16.msra.mxu1 %v2755_v1 }
 0x18c   :  { %2760 = vmatprep.subr.bf16.mxu1 %v2759_v48 }
 0x18e   :  { %2601 = vmatmul.mubr.f32.vlgmr.msra.gmra.mrb[0].mxu1 %v3216_v11 }
 0x18f   :  { %2762 = vmatpush3.bf16.msra.mxu1 %v2759_v48  ;;  %2611 = vmatprep.mubr.f32.mxu1 %v3192_v57  ;;  %v2999_v57 = vmov 0.0|0.0  }
 0x190   :  { %2764 = vmatprep.subr.bf16.mxu1 %v2763_v50 }
 0x193   :  { %2766 = vmatpush3.bf16.msra.mxu1 %v2763_v50 }
 0x194   :  { %2768 = vmatprep.subr.bf16.mxu1 %v2743_v39 }
 0x196   :  { %2612 = vmatmul.mubr.f32.vlgmr.msra.gmra.mrb[0].mxu1 %v3219_v23 }
 0x197   :  { %2770 = vmatpush3.bf16.msra.mxu1 %v2743_v39  ;;  %2622 = vmatprep.mubr.f32.mxu1 %v895_v58  ;;  %v3001_v58 = vmov 0.0  }
 0x198   :  { %2772 = vmatprep.subr.bf16.mxu1 %v2747_v42  ;;  %2689 = vmatprep.subr.mxu0 %v3001_v58 }
 0x199   :  { %2691 = vmatprep.mubr.msk.f32.mxu0 %vm3000_vm3, %v3001_v58 }
 0x19b   :  { %2774 = vmatpush3.bf16.msra.mxu1 %v2747_v42 }
 0x19c   :  { %2776 = vmatprep.subr.bf16.mxu1 %v2775_v53 }
 0x19e   :  { %2623 = vmatmul.mubr.f32.vlgmr.msra.gmra.mrb[0].mxu1 %v905_v33 }
 0x19f   :  { %2778 = vmatpush3.bf16.msra.mxu1 %v2775_v53  ;;  %2633 = vmatprep.mubr.f32.mxu1 %v3189_v56 }
 0x1a0   :  { %2780 = vmatprep.subr.bf16.mxu1 %v2779_v55 }
 0x1a3   :  { %2782 = vmatpush3.bf16.msra.mxu1 %v2779_v55 }
 0x1a4   :  { %2784 = vmatprep.subr.bf16.mxu1 %v2743_v39 }
 0x1a6   :  { %2634 = vmatmul.mubr.f32.vlgmr.msra.gmra.mrb[0].mxu1 %v3216_v11 }
 0x1a7   :  { %2786 = vmatpush3.bf16.msra.mxu1 %v2743_v39  ;;  %2644 = vmatprep.mubr.f32.mxu1 %v3189_v56  ;;  %v3003_v56 = vmov 7   ;;  %v1478_v39 = vand.u32 4294901760, %v1409_v38 }
 0x1a8   :  { %2788 = vmatprep.subr.bf16.mxu1 %v2747_v42  ;;  %2902 = vset.pattern.permute.xlu1 %v3003_v56 }
 0x1a9   :  { %1405 = vperm.xlu1 %2902, %v3099_v15  }
 0x1ab   :  { %2790 = vmatpush3.bf16.msra.mxu1 %v2747_v42  ;;  %v1479_v42 = vsub.f32 %v1409_v38, %v1478_v39 }
 0x1ac   :  { %2791 = vmatprep.subr.bf16.mxu1 %v2999_v57 }
 0x1ad   :  { %2903 = vset.pattern.permute.xlu1 %v3005_v3  ;;  %v1480_v49 = vand.u32 4294901760, %v1479_v42 }
 0x1ae   :  { %2645 = vmatmul.mubr.f32.vlgmr.msra.gmra.mrb[0].mxu1 %v3216_v11  ;;  %1893 = vperm.xlu1 %2903, %v3099_v15  }
 0x1af   :  { %2651 = vmatprep.mubr.msk.f32.mxu1 %vm3000_vm3, %v3001_v58  ;;  %v1481_v53 = vsub.f32 %v1479_v42, %v1480_v49 }
 0x1b1   :  { %v1482_v62 = vand.u32 4294901760, %v1481_v53 }
 0x281   :  { %v2646_v6 = vpop.f32.mrb[0].mxu1 }
 0x282   :  { %v2813_v7 = vadd.f32 %v2646_v6, %v815_v4  ;;  %v1342_v8 = vpop.f32.mrb[1].mxu1 }
 0x283   :  { %v2814_v9 = vadd.f32 %v1342_v8, %v811_v5  ;;  %v57_v8 = vld [vmem:[%s3300_s5] sm:$0x1]  ;;  %s3007_s5 = smov [#allocation7]  }
 0x284   :  { %v1353_v10 = vsel %vm719_vm2, %v2813_v7, 0.0  ;;  %s2407_s19 = sshll.u32 %s3007_s5, 4  ;;  %s2408_s19 = int_to_ptr.vmem [resolvable:$true] %s2407_s19 }
 0x285   :  { %v1352_v11 = vsel %vm719_vm2, %v2814_v9, 0.0  ;;  %s2960_s20 = scalar_lea.vmem %s2408_s19, 16  ;;  %s2964_s3 = scalar_lea.vmem %s2408_s19, 32 }
 0x286   :  { %v1354_v12 = vadd.f32 %v1353_v10, %v1352_v11  ;;  %v1406_v10 = vpop.permute.xlu1 %1405  ;;  %p2961_p2 = scmp.ne.s32.totalorder %s2408_s19, %s2960_s20  ;;  %p2965_p3 = scmp.lt.s32.totalorder %s2408_s19, %s2408_s19 }
 0x287   :  { %p2966_p4 = scmp.lt.s32.totalorder %s2964_s3, %s2960_s20 }
 0x288   :  { %v1355_v13 = vrot.slane %v1354_v12, 4 }
 0x289   :  { %p2967_p5 = por %p2966_p4, %p2965_p3 }
 0x28a   :  { %v1356_v14 = vadd.f32 %v1355_v13, %v1354_v12 }
 0x28b   :  { %p2968_p6 = pnand %p2967_p5, %p2961_p2 }
 0x28c   :  { %v1357_v16 = vrot.slane %v1356_v14, 2 }
 0x28e   :  { %v1358_v17 = vadd.f32 %v1357_v16, %v1356_v14 }
 0x290   :  { %v1359_v18 = vrot.slane %v1358_v17, 1 }
 0x292   :  { %v1360_v19 = vadd.f32 %v1359_v18, %v1358_v17 }
 0x294   :  { %v1362_v20 = vmul.f32 0.0625, %v1360_v19 }
 0x296   :  { %v1363_v21 = vsub.f32 %v2814_v9, %v1362_v20  ;;  %v1364_v15 = vsub.f32 %v2813_v7, %v1362_v20  ;;  %v1909_v7 = vpop.permute.xlu0 %1908  ;;  %v3006_v9 = vmov 11  }
 0x297   :  { %1911 = vxpose.xlu1.b32.start.end [1/1] (short) (narrow) %v1909_v7, 8  ;;  %2905 = vset.pattern.permute.xlu0 %v3006_v9 }
 0x298   :  { %v1365_v22 = vmul.f32 %v1363_v21, %v1363_v21  ;;  %v1366_v23 = vmul.f32 %v1364_v15, %v1364_v15  ;;  %1905 = vperm.xlu0 %2905, %v57_v8  }
 0x29a   :  { %v1367_v24 = vsel %vm719_vm2, %v1365_v22, 0.0  ;;  %v1368_v25 = vsel %vm719_vm2, %v1366_v23, 0.0 }
 0x29b   :  { %v1369_v26 = vadd.f32 %v1368_v25, %v1367_v24 }
 0x29d   :  { %v1370_v28 = vrot.slane %v1369_v26, 4 }
 0x29f   :  { %v1371_v29 = vadd.f32 %v1370_v28, %v1369_v26 }
 0x2a1   :  { %v1372_v30 = vrot.slane %v1371_v29, 2 }
 0x2a3   :  { %v1373_v31 = vadd.f32 %v1372_v30, %v1371_v29 }
 0x2a5   :  { %v1374_v32 = vrot.slane %v1373_v31, 1 }
 0x2a7   :  { %v1375_v33 = vadd.f32 %v1374_v32, %v1373_v31  ;;  %v1894_v31 = vpop.permute.xlu1 %1893 }
 0x2a9   :  { %v1376_v34 = vmul.f32 0.0625, %v1375_v33 }
 0x2ab   :  { %v1377_v35 = vadd.f32 1e-05, %v1376_v34 }
 0x2ad   :  { %2908 = vrsqrt.f32 %v1377_v35 }
 0x2b7   :  { %v2909_v41 = vpop.eup %2908 }
 0x2b8   :  { %v1379_v43 = vmul.f32 %v2909_v41, %v1363_v21  ;;  %v1380_v44 = vmul.f32 %v2909_v41, %v1364_v15  ;;  %v1899_v41 = vpop.permute.xlu0 %1898 }
 0x2ba   :  { %v1389_v47 = vmul.f32 %v1383_v37, %v1379_v43  ;;  %v1390_v48 = vmul.f32 %v1387_v40, %v1380_v44 }
 0x2bc   :  { %v1400_v50 = vadd.f32 %v1397_v45, %v1390_v48  ;;  %v1399_v51 = vadd.f32 %v1393_v46, %v1389_v47 }
 0x2be   :  { %v1402_v27 = vmax.f32 %v1400_v50, 0.0  ;;  %v1401_v52 = vmax.f32 %v1399_v51, 0.0 }
 0x2c0   :  { %v1415_v54 = vand.u32 4294901760, %v1402_v27  ;;  %v1412_v55 = vand.u32 4294901760, %v1401_v52 }
 0x2c2   :  { %v1497_v59 = vsub.f32 %v1402_v27, %v1415_v54  ;;  %v2792_v60 = vpack.c.bf16 %v1415_v54, %v1412_v55  ;;  %v1490_v61 = vsub.f32 %v1401_v52, %v1412_v55 }
 0x2c4   :  { %v1498_v63 = vand.u32 4294901760, %v1497_v59  ;;  %v1491_v0 = vand.u32 4294901760, %v1490_v61  ;;  %2793 = vmatpush3.bf16.msra.mxu1 %v2792_v60  ;;  %v2798_v1 = vpack.c.bf16 %v1497_v59, %v1490_v61 }
 0x2c5   :  { %2794 = vmatprep.subr.bf16.mxu1 %v2999_v57 }
 0x2c6   :  { %v1499_v56 = vsub.f32 %v1497_v59, %v1498_v63  ;;  %v1492_v2 = vsub.f32 %v1490_v61, %v1491_v0  ;;  %v2804_v3 = vpack.c.bf16 %v1498_v63, %v1491_v0 }
 0x2c7   :  { %2652 = vmatmul.mubr.f32.vlgmr.msra.gmra.mrb[2].mxu1 %v1482_v62 }
 0x2c8   :  { %v1500_v4 = vand.u32 4294901760, %v1499_v56  ;;  %v1493_v5 = vand.u32 4294901760, %v1492_v2  ;;  %2658 = vmatprep.mubr.msk.f32.mxu1 %vm3000_vm3, %v3001_v58 }
 0x2ca   :  { %v2795_v6 = vpack.c.bf16 %v1500_v4, %v1493_v5 }
 0x2cc   :  { %2796 = vmatpush3.bf16.msra.mxu1 %v2795_v6 }
 0x2cd   :  { %2797 = vmatprep.subr.bf16.mxu1 %v2999_v57 }
 0x2cf   :  { %2659 = vmatmul.mubr.f32.vlgmr.msra.gmra.mrb[2].mxu1 %v1478_v39 }
 0x2d0   :  { %2799 = vmatpush3.bf16.msra.mxu1 %v2798_v1  ;;  %2665 = vmatprep.mubr.msk.f32.mxu1 %vm3000_vm3, %v3001_v58 }
 0x2d1   :  { %2800 = vmatprep.subr.bf16.mxu1 %v2999_v57 }
 0x2d7   :  { %2666 = vmatmul.mubr.f32.vlgmr.msra.gmra.mrb[2].mxu1 %v1479_v42 }
 0x2d8   :  { %2802 = vmatpush3.bf16.msra.mxu1 %v2792_v60  ;;  %2672 = vmatprep.mubr.msk.f32.mxu1 %vm3000_vm3, %v3001_v58 }
 0x2d9   :  { %2803 = vmatprep.subr.bf16.mxu1 %v2999_v57 }
 0x2df   :  { %2673 = vmatmul.mubr.f32.vlgmr.msra.gmra.mrb[2].mxu1 %v1480_v49 }
 0x2e0   :  { %2805 = vmatpush3.bf16.msra.mxu1 %v2804_v3  ;;  %2679 = vmatprep.mubr.msk.f32.mxu1 %vm3000_vm3, %v3001_v58 }
 0x2e1   :  { %2806 = vmatprep.subr.bf16.mxu1 %v2999_v57 }
 0x2e7   :  { %2680 = vmatmul.mubr.f32.vlgmr.msra.gmra.mrb[2].mxu1 %v1478_v39 }
 0x2e8   :  { %2808 = vmatpush3.bf16.msra.mxu1 %v2792_v60  ;;  %2686 = vmatprep.mubr.msk.f32.mxu1 %vm3000_vm3, %v3001_v58 }
 0x2ef   :  { %2687 = vmatmul.mubr.f32.vlgmr.msra.gmra.mrb[2].mxu1 %v1478_v39 }
 0x317   :  { %v1927_v34 = vpop.trf.xlu1  ;;  %v1906_v27 = vpop.permute.xlu0 %1905 }
 0x318   :  { %v1945_v35 = vsel %vm1943_vm4, %v1927_v34, 0 }
 0x319   :  { %v2013_v36 = vand.u32 4294901760, %v1945_v35 }
 0x31b   :  { %v2014_v37 = vsub.f32 %v1945_v35, %v2013_v36 }
 0x31d   :  { %v2015_v40 = vand.u32 4294901760, %v2014_v37 }
 0x31f   :  { %v2016_v44 = vsub.f32 %v2014_v37, %v2015_v40 }
 0x321   :  { %v2017_v47 = vand.u32 4294901760, %v2016_v44 }
 0x3c2   :  { %v1866_v11 = vpop.f32.mrb[2].mxu1 }
 0x3c3   :  { %v2815_v12 = vadd.f32 %v1866_v11, %v1406_v10  ;;  %v2688_v13 = vpop.f32.mrb[3].mxu1 }
 0x3c5   :  { %v1870_v57 = vsel %vm719_vm2, %v2815_v12, 0.0 }
 0x3c6   :  { %v1871_v14 = vrot.slane %v1870_v57, 4 }
 0x3c8   :  { %v1872_v16 = vadd.f32 %v1871_v14, %v1870_v57 }
 0x3ca   :  { %v1873_v17 = vrot.slane %v1872_v16, 2 }
 0x3cc   :  { %v1874_v18 = vadd.f32 %v1873_v17, %v1872_v16 }
 0x3ce   :  { %v1875_v19 = vrot.slane %v1874_v18, 1 }
 0x3d0   :  { %v1876_v20 = vadd.f32 %v1875_v19, %v1874_v18 }
 0x3d2   :  { %v1878_v21 = vmul.f32 0.125, %v1876_v20 }
 0x3d4   :  { %v1879_v15 = vsub.f32 %v2815_v12, %v1878_v21 }
 0x3d6   :  { %v1880_v22 = vmul.f32 %v1879_v15, %v1879_v15 }
 0x3d8   :  { %v1881_v23 = vsel %vm719_vm2, %v1880_v22, 0.0 }
 0x3d9   :  { %v1882_v24 = vrot.slane %v1881_v23, 4 }
 0x3db   :  { %v1883_v25 = vadd.f32 %v1882_v24, %v1881_v23 }
 0x3dd   :  { %v1884_v26 = vrot.slane %v1883_v25, 2 }
 0x3df   :  { %v1885_v28 = vadd.f32 %v1884_v26, %v1883_v25 }
 0x3e1   :  { %v1886_v29 = vrot.slane %v1885_v28, 1 }
 0x3e3   :  { %v1887_v30 = vadd.f32 %v1886_v29, %v1885_v28 }
 0x3e5   :  { %v1888_v32 = vmul.f32 0.125, %v1887_v30 }
 0x3e7   :  { %v1889_v33 = vadd.f32 1e-05, %v1888_v32 }
 0x3e9   :  { %2910 = vrsqrt.f32 %v1889_v33 }
 0x3f3   :  { %v2911_v38 = vpop.eup %2910 }
 0x3f4   :  { %v1891_v39 = vmul.f32 %v2911_v38, %v1879_v15 }
 0x3f6   :  { %v1896_v42 = vmul.f32 %v1894_v31, %v1891_v39 }
 0x3f8   :  { %v1901_v43 = vadd.f32 %v1899_v41, %v1896_v42 }
 0x3fa   :  { %v1902_v45 = vmax.f32 %v1901_v43, 0.0 }
 0x3fc   :  { %v1948_v46 = vand.u32 4294901760, %v1902_v45 }
 0x3fe   :  { %v2025_v48 = vsub.f32 %v1902_v45, %v1948_v46  ;;  %2690 = vmatpush3.msra.mxu0 %v1948_v46 }
 0x3ff   :  { %2692 = vmatmul.mubr.f32.vlgmr.msra.gmra.mrb[4].mxu0 %v2017_v47  ;;  %2694 = vmatprep.subr.mxu0 %v3001_v58 }
 0x400   :  { %v2026_v49 = vand.u32 4294901760, %v2025_v48  ;;  %2696 = vmatprep.mubr.msk.f32.mxu0 %vm3000_vm3, %v3001_v58 }
 0x402   :  { %v2027_v50 = vsub.f32 %v2025_v48, %v2026_v49 }
 0x404   :  { %v2028_v51 = vand.u32 4294901760, %v2027_v50 }
 0x406   :  { %2695 = vmatpush3.msra.mxu0 %v2028_v51 }
 0x407   :  { %2697 = vmatmul.mubr.f32.vlgmr.msra.gmra.mrb[4].mxu0 %v2013_v36  ;;  %2699 = vmatprep.subr.mxu0 %v3001_v58 }
 0x408   :  { %2700 = vmatpush3.msra.mxu0 %v2025_v48  ;;  %2701 = vmatprep.mubr.msk.f32.mxu0 %vm3000_vm3, %v3001_v58 }
 0x409   :  { %2704 = vmatprep.subr.mxu0 %v3001_v58 }
 0x40f   :  { %2702 = vmatmul.mubr.f32.vlgmr.msra.gmra.mrb[4].mxu0 %v2014_v37 }
 0x410   :  { %2705 = vmatpush3.msra.mxu0 %v1948_v46  ;;  %2706 = vmatprep.mubr.msk.f32.mxu0 %vm3000_vm3, %v3001_v58 }
 0x411   :  { %2709 = vmatprep.subr.mxu0 %v3001_v58 }
 0x417   :  { %2707 = vmatmul.mubr.f32.vlgmr.msra.gmra.mrb[4].mxu0 %v2015_v40 }
 0x418   :  { %2710 = vmatpush3.msra.mxu0 %v2026_v49  ;;  %2711 = vmatprep.mubr.msk.f32.mxu0 %vm3000_vm3, %v3001_v58 }
 0x419   :  { %2714 = vmatprep.subr.mxu0 %v3001_v58 }
 0x41f   :  { %2712 = vmatmul.mubr.f32.vlgmr.msra.gmra.mrb[4].mxu0 %v2013_v36 }
 0x420   :  { %2715 = vmatpush3.msra.mxu0 %v1948_v46  ;;  %2716 = vmatprep.mubr.msk.f32.mxu0 %vm3000_vm3, %v3001_v58 }
 0x427   :  { %2717 = vmatmul.mubr.f32.vlgmr.msra.gmra.mrb[4].mxu0 %v2013_v36 }
 0x4fa   :  { %v2389_v52 = vpop.f32.mrb[4].mxu0 }
 0x4fb   :  { %v2816_v53 = vadd.f32 %v2389_v52, %v1906_v27  ;;  %v2718_v54 = vpop.f32.mrb[5].mxu0 }
 0x4fd   :  { %v2418_v55 = vmul.f32 -1.442695, %v2816_v53 }
 0x4ff   :  { %2912 = vpow2.f32 %v2418_v55 }
 0x509   :  { %v2913_v59 = vpop.eup %2912 }
 0x50a   :  { %v2396_v60 = vadd.f32 1.0, %v2913_v59 }
 0x50c   :  { %2914 = vrcp.f32 %v2396_v60 }
 0x516   :  { %v2915_v61 = vpop.eup %2914 }
 0x517   :  { %2400 = vst.msk [vmem:[#allocation7] sm:$0x1] %vm2399_vm5, %v2915_v61 }
 0x518   :  { %2971 = shalt.err (!%p2968_p6)
}
 0x519   :  { %s2972_s23 = scalar_lea.hbm %s3301_s6, 16 }
 0x51a   :  { %p2973_p7 = scmp.ne.s32.totalorder %s3301_s6, %s2972_s23  ;;  %p2976_p8 = scmp.lt.u32.totalorder %s2972_s23, %s3301_s6 }
 0x51c   :  { %p2978_p9 = pnand %p2976_p8, %p2973_p7 }
 0x51e   :  { %2981 = shalt.err (!%p2978_p9)
}
 0x51f   :  { %2410 = dma.vmem_to_hbm [thread:$0]  %s2408_s19, 16, %s3301_s6, [#allocation4]  }
 0x520   :  { %2986 = dma.done.wait [#allocation4], 16  }
 0x521   :  { %2987 = vsyncadd [#allocation4], 4294967280 }
 0x522   :  { %2414 = vsyncpa [#allocation3], 1 }
 0x523   :  { %2415 = vsyncpa [#allocation6], 1 }
 0x524   :  { %2416 = vsyncpa [#allocation4], 1 }

</bundles_post_ra>
